<compile_context>
chip_gen: v6e
topology: v6e:2x2x1
jax: 0.10.0
libtpu: 0.0.40
codegen_flags: <defaults>
</compile_context>

<pallas_src>
import functools

import jax
import jax.numpy as jnp
from jax.experimental import pallas as pl
from jax.experimental.pallas import tpu as pltpu

NUM_CLASSES = 6
BETA = 1.0
KLD_WEIGHT = 256.0 / 6000.0   # constant in the reference module, independent of B
BN_EPS = 1e-5


def _bn_silu(v, gamma, beta, inv_b):
    """Training-mode BatchNorm1d (biased batch variance) + SiLU, one stats pass.

    Note: var = E[v^2] - mu^2 can lose precision for large-mean activations;
    harmless at this init scale (activations are O(1))."""
    s1 = jnp.sum(v, axis=0, keepdims=True)
    s2 = jnp.sum(v * v, axis=0, keepdims=True)
    mu = s1 * inv_b
    var = s2 * inv_b - mu * mu
    scale = gamma * jax.lax.rsqrt(var + BN_EPS)
    shift = beta - mu * scale
    y = v * scale + shift
    return y * jax.nn.sigmoid(y)


def vae_kernel(
    x_ref, lab_ref, eps_ref,
    w01_ref,          # bf16 (in_f, pad128(in_f + mid)) = [ W0 | W0@W1x | 0-pad ]
    w1lb_ref,         # f32  (NUM_CLASSES, mid)   rows = W1lab[c] + (b0@W1x + b1)
    wmv_ref,          # bf16 (mid, 2*mid)         [ fc_mean | fc_var ]
    w2_ref,           # bf16 (mid, in_f)
    w3_ref,           # bf16 (in_f, in_f)
    consts_ref,       # f32  (8, slab_w)          packed bias/gamma/beta rows
    out_ref,          # f32  (B, pad128(mid + in_f + 1))
):
    x = x_ref[...]
    B, in_f = x.shape
    mid = eps_ref.shape[1]
    inv_b = 1.0 / B

    # ---- unpack the constant slab (one DMA, one load) ----
    consts = consts_ref[...]
    bmv = consts[0:1, 0:2 * mid]    # fused [b_mean | b_var]
    g1 = consts[1:2, 0:mid]
    be1 = consts[2:3, 0:mid]
    b0 = consts[3:4, 0:in_f]
    b2 = consts[4:5, 0:in_f]
    g2 = consts[5:6, 0:in_f]
    be2 = consts[6:7, 0:in_f]
    b3 = consts[7:8, 0:in_f]

    def mm(a_f32, w_ref):
        # bf16 MXU operands, f32 accumulation.
        return jnp.dot(a_f32.astype(jnp.bfloat16), w_ref[...],
                       preferred_element_type=jnp.float32)

    # ---- fused fc0 + fc1(x-part): one matmul, sliced ----
    xw = mm(x, w01_ref)                       # (B, pad128(in_f + mid))
    x0 = xw[:, 0:in_f] + b0                   # fc0(x), also the recon target
    h_pre = xw[:, in_f:in_f + mid]            # x @ (W0 @ W1x)

    # ---- label addend: (W1lab + b01)[label] via class-row selects ----
    w1lb = w1lb_ref[...]                      # (NUM_CLASSES, mid)
    lab = lab_ref[...]                        # (B, 1) int32
    addend = jnp.broadcast_to(w1lb[0:1, :], (B, mid))
    for c in range(1, NUM_CLASSES):
        addend = jnp.where(lab == c, w1lb[c:c + 1, :], addend)

    h = _bn_silu(h_pre + addend, g1, be1, inv_b)

    # ---- fused encoder heads: [fc_mean | fc_var] in one 2*mid-wide matmul ----
    hv = mm(h, wmv_ref) + bmv
    mean = hv[:, 0:mid]
    log_var = hv[:, mid:]

    # ---- reparametrization: z = mean + eps * exp(0.5 * log_var) ----
    std = jnp.exp(0.5 * log_var)              # single exp; var = std*std reused
    z = mean + eps_ref[...] * std

    # ---- decoder ----
    y = _bn_silu(mm(z, w2_ref) + b2, g2, be2, inv_b)
    x_hat = mm(y, w3_ref) + b3

    # ---- losses (reference reassigns x = fc0(x), so MSE target is x0) ----
    recons = jnp.sum(
        jnp.sum((x_hat - x0) ** 2, axis=1, keepdims=True), axis=0, keepdims=True
    ) * (inv_b / in_f)
    var = std * std                           # == exp(log_var), no second exp
    kld = jnp.sum(
        jnp.sum(1.0 + log_var - mean * mean - var, axis=1, keepdims=True),
        axis=0, keepdims=True,
    ) * (-0.5 * inv_b)
    loss = recons + BETA * KLD_WEIGHT * kld   # (1, 1)

    # ---- single unmasked lane-dense store: [ z | x_hat | loss over pad ] ----
    pad = out_ref.shape[1] - (mid + in_f)
    out_ref[...] = jnp.concatenate(
        [z, x_hat, jnp.broadcast_to(loss, (B, pad))], axis=1)


def init_raw_params(key, in_features, mid_features):
    """Raw (PyTorch-layout-equivalent) params; weights stored (in, out)."""
    ks = jax.random.split(key, 6)
    scale = 0.05

    def lin(k, fan_in, fan_out):
        kw, kb = jax.random.split(k)
        w = jax.random.normal(kw, (fan_in, fan_out), jnp.float32) * scale
        b = jax.random.normal(kb, (1, fan_out), jnp.float32) * scale
        return w, b

    w0, b0 = lin(ks[0], in_features, in_features)
    w1, b1 = lin(ks[1], in_features + NUM_CLASSES, mid_features)
    wm, bm = lin(ks[2], mid_features, mid_features)
    wv, bv = lin(ks[3], mid_features, mid_features)
    w2, b2 = lin(ks[4], mid_features, in_features)
    w3, b3 = lin(ks[5], in_features, in_features)
    return dict(w0=w0, b0=b0, w1=w1, b1=b1, wm=wm, bm=bm, wv=wv, bv=bv,
                w2=w2, b2=b2, w3=w3, b3=b3)


def pack_params(raw, in_features, mid_features):
    """Kernel-ready params: fused fc0+fc1x weight, label row table with bias
    folded in, fused [fc_mean|fc_var] head, packed constant slab."""
    w0, b0 = raw["w0"], raw["b0"]
    w1, b1 = raw["w1"], raw["b1"]
    w1x = w1[:in_features]                     # (in, mid)
    w1l = w1[in_features:]                     # (6, mid)

    # Algebraic fusion: h_pre = x @ (W0 @ W1x) + (b0 @ W1x + b1) + W1lab[label]
    w01 = w0 @ w1x                             # (in, mid) f32
    b01 = b0 @ w1x + b1                        # (1, mid)
    w1lb = w1l + b01                           # (6, mid), b01 folded per class

    fused = jnp.concatenate([w0, w01], axis=1)           # (in, in+mid)
    fused_cols = in_features + mid_features
    pad_cols = (-fused_cols) % 128
    if pad_cols:
        fused = jnp.concatenate(
            [fused, jnp.zeros((in_features, pad_cols), jnp.float32)], axis=1)

    # Constant slab: 8 rows, each vector in its own row starting at lane 0.
    slab_w = max(2 * mid_features, in_features)

    def row(v):
        r = jnp.zeros((1, slab_w), jnp.float32)
        return r.at[:, :v.shape[1]].set(v)

    consts = jnp.concatenate([
        row(jnp.concatenate([raw["bm"], raw["bv"]], axis=1)),       # 0: bmv
        row(jnp.ones((1, mid_features), jnp.float32)),              # 1: gamma1
        row(jnp.zeros((1, mid_features), jnp.float32)),             # 2: beta1
        row(b0),                                                    # 3: b0
        row(raw["b2"]),                                             # 4: b2
        row(jnp.ones((1, in_features), jnp.float32)),               # 5: gamma2
        row(jnp.zeros((1, in_features), jnp.float32)),              # 6: beta2
        row(raw["b3"]),                                             # 7: b3
    ], axis=0)

    return dict(
        w01=fused.astype(jnp.bfloat16),
        w1lb=w1lb,
        wmv=jnp.concatenate([raw["wm"], raw["wv"]], axis=1).astype(jnp.bfloat16),
        w2=raw["w2"].astype(jnp.bfloat16),
        w3=raw["w3"].astype(jnp.bfloat16),
        consts=consts,
    )


@functools.partial(jax.jit, static_argnames=("in_features", "mid_features"))
def vae_forward(x, label, eps, params, *, in_features, mid_features):
    B = x.shape[0]
    label2d = label.reshape(B, 1).astype(jnp.int32)

    # Single lane-dense output slab: [ z (mid) | x_hat (in) | loss + pad ].
    out_width = ((mid_features + in_features + 1 + 127) // 128) * 128

    vmem = pl.BlockSpec(memory_space=pltpu.MemorySpace.VMEM)
    operands = (
        x, label2d, eps,
        params["w01"], params["w1lb"], params["wmv"],
        params["w2"], params["w3"], params["consts"],
    )

    fused_cols = params["w01"].shape[1]
    flops = 2 * B * (in_features * fused_cols
                     + mid_features * 2 * mid_features
                     + mid_features * in_features
                     + in_features * in_features)
    transcendentals = B * (2 * mid_features + in_features) + mid_features + in_features
    bytes_accessed = (sum(int(op.size) * op.dtype.itemsize for op in operands)
                      + B * out_width * 4)

    packed = pl.pallas_call(
        vae_kernel,
        out_shape=jax.ShapeDtypeStruct((B, out_width), jnp.float32),
        in_specs=[vmem] * len(operands),
        out_specs=vmem,
        cost_estimate=pl.CostEstimate(
            flops=flops, transcendentals=transcendentals,
            bytes_accessed=bytes_accessed),
    )(*operands)

    z = packed[:, :mid_features]
    x_hat = packed[:, mid_features:mid_features + in_features]
    loss = packed[0, mid_features + in_features]
    return loss, z, x_hat


def vae_reference(x, label, eps, raw):
    """Pure-JAX f32 reference of the PyTorch forward (training-mode BN)."""
    def bn(v):
        mu = jnp.mean(v, axis=0, keepdims=True)
        var = jnp.mean((v - mu) ** 2, axis=0, keepdims=True)
        return (v - mu) / jnp.sqrt(var + BN_EPS)

    x0 = x @ raw["w0"] + raw["b0"]
    one_hot = jax.nn.one_hot(label, NUM_CLASSES, dtype=jnp.float32)
    xc = jnp.concatenate([x0, one_hot], axis=1)
    h = jax.nn.silu(bn(xc @ raw["w1"] + raw["b1"]))
    mean = h @ raw["wm"] + raw["bm"]
    log_var = h @ raw["wv"] + raw["bv"]
    z = mean + eps * jnp.exp(0.5 * log_var)
    y = jax.nn.silu(bn(z @ raw["w2"] + raw["b2"]))
    x_hat = y @ raw["w3"] + raw["b3"]
    recons = jnp.mean((x_hat - x0) ** 2)
    kld = jnp.mean(-0.5 * jnp.sum(1.0 + log_var - mean ** 2 - jnp.exp(log_var), axis=1))
    loss = recons + BETA * KLD_WEIGHT * kld
    return loss, z, x_hat


if __name__ == "__main__":
    in_features = 32
    mid_features = 64
    batch = 16   # multiple of 16 fills the bf16 sublane packing; still small.

    key = jax.random.PRNGKey(0)
    k_x, k_lab, k_eps, k_par = jax.random.split(key, 4)

    x = jax.random.normal(k_x, (batch, in_features), jnp.float32)
    label = jax.random.randint(k_lab, (batch,), 0, NUM_CLASSES, jnp.int32)
    # TODO(synk): torch.randn epsilon cannot be bit-reproduced; deterministic
    # JAX normal noise with the same distribution is passed in instead.
    eps = jax.random.normal(k_eps, (batch, mid_features), jnp.float32)

    raw = init_raw_params(k_par, in_features, mid_features)
    params = pack_params(raw, in_features, mid_features)

    loss, z, x_hat = vae_forward(
        x, label, eps, params,
        in_features=in_features, mid_features=mid_features,
    )
    jax.block_until_ready((loss, z, x_hat))

    assert loss.shape == ()
    assert z.shape == (batch, mid_features)
    assert x_hat.shape == (batch, in_features)
    assert jnp.isfinite(loss)
    assert bool(jnp.all(jnp.isfinite(z))) and bool(jnp.all(jnp.isfinite(x_hat)))

    # Loose tolerance: kernel uses bf16 MXU operands with f32 accumulation.
    ref_loss, ref_z, ref_xhat = vae_reference(x, label, eps, raw)
    assert bool(jnp.allclose(z, ref_z, atol=5e-2, rtol=5e-2))
    assert bool(jnp.allclose(x_hat, ref_xhat, atol=5e-2, rtol=5e-2))
    assert bool(jnp.allclose(loss, ref_loss, atol=5e-2, rtol=5e-2))

    print("KERNEL_OK")
</pallas_src>

<mosaic_0001>
module attributes {stable_mosaic.version = 11 : i64} {
  func.func @vae_kernel(%arg0: memref<16x32xf32, #tpu.memory_space<vmem>>, %arg1: memref<16x1xi32, #tpu.memory_space<vmem>>, %arg2: memref<16x64xf32, #tpu.memory_space<vmem>>, %arg3: memref<32x128xbf16, #tpu.memory_space<vmem>>, %arg4: memref<6x64xf32, #tpu.memory_space<vmem>>, %arg5: memref<64x128xbf16, #tpu.memory_space<vmem>>, %arg6: memref<64x32xbf16, #tpu.memory_space<vmem>>, %arg7: memref<32x32xbf16, #tpu.memory_space<vmem>>, %arg8: memref<8x128xf32, #tpu.memory_space<vmem>>, %arg9: memref<16x128xf32, #tpu.memory_space<vmem>>) attributes {dimension_semantics = [], scalar_prefetch = 0 : i64, scratch_operands = 0 : i64, tpu.core_type = #tpu.core_type<tc>} {
    %c0 = arith.constant 0 : index
    %c0_0 = arith.constant 0 : index
    %0 = vector.load %arg0[%c0, %c0_0] : memref<16x32xf32, #tpu.memory_space<vmem>>, vector<16x32xf32>
    %c0_1 = arith.constant 0 : index
    %c0_2 = arith.constant 0 : index
    %1 = vector.load %arg8[%c0_1, %c0_2] : memref<8x128xf32, #tpu.memory_space<vmem>>, vector<8x128xf32>
    %2 = vector.extract_strided_slice %1 {offsets = [0, 0], sizes = [1, 128], strides = [1, 1]} : vector<8x128xf32> to vector<1x128xf32>
    %3 = vector.extract_strided_slice %1 {offsets = [1, 0], sizes = [1, 64], strides = [1, 1]} : vector<8x128xf32> to vector<1x64xf32>
    %4 = vector.extract_strided_slice %1 {offsets = [2, 0], sizes = [1, 64], strides = [1, 1]} : vector<8x128xf32> to vector<1x64xf32>
    %5 = vector.extract_strided_slice %1 {offsets = [3, 0], sizes = [1, 32], strides = [1, 1]} : vector<8x128xf32> to vector<1x32xf32>
    %6 = vector.extract_strided_slice %1 {offsets = [4, 0], sizes = [1, 32], strides = [1, 1]} : vector<8x128xf32> to vector<1x32xf32>
    %7 = vector.extract_strided_slice %1 {offsets = [5, 0], sizes = [1, 32], strides = [1, 1]} : vector<8x128xf32> to vector<1x32xf32>
    %8 = vector.extract_strided_slice %1 {offsets = [6, 0], sizes = [1, 32], strides = [1, 1]} : vector<8x128xf32> to vector<1x32xf32>
    %9 = vector.extract_strided_slice %1 {offsets = [7, 0], sizes = [1, 32], strides = [1, 1]} : vector<8x128xf32> to vector<1x32xf32>
    %10 = arith.truncf %0 : vector<16x32xf32> to vector<16x32xbf16>
    %c0_3 = arith.constant 0 : index
    %c0_4 = arith.constant 0 : index
    %11 = vector.load %arg3[%c0_3, %c0_4] : memref<32x128xbf16, #tpu.memory_space<vmem>>, vector<32x128xbf16>
    %cst = arith.constant dense<0.000000e+00> : vector<16x128xf32>
    %12 = tpu.matmul %10, %11, %cst {dimension_numbers = #tpu.dot_dimension_numbers<[1], [0], [0], [1], [0, 0, 1, 1], [], []>} : vector<16x32xbf16>, vector<32x128xbf16>, vector<16x128xf32> -> vector<16x128xf32>
    %13 = vector.extract_strided_slice %12 {offsets = [0, 0], sizes = [16, 32], strides = [1, 1]} : vector<16x128xf32> to vector<16x32xf32>
    %14 = vector.broadcast %5 : vector<1x32xf32> to vector<16x32xf32>
    %15 = arith.addf %13, %14 : vector<16x32xf32>
    %16 = vector.extract_strided_slice %12 {offsets = [0, 32], sizes = [16, 64], strides = [1, 1]} : vector<16x128xf32> to vector<16x64xf32>
    %c0_5 = arith.constant 0 : index
    %c0_6 = arith.constant 0 : index
    %17 = vector.load %arg4[%c0_5, %c0_6] : memref<6x64xf32, #tpu.memory_space<vmem>>, vector<6x64xf32>
    %c0_7 = arith.constant 0 : index
    %c0_8 = arith.constant 0 : index
    %18 = vector.load %arg1[%c0_7, %c0_8] : memref<16x1xi32, #tpu.memory_space<vmem>>, vector<16x1xi32>
    %19 = vector.extract_strided_slice %17 {offsets = [0, 0], sizes = [1, 64], strides = [1, 1]} : vector<6x64xf32> to vector<1x64xf32>
    %20 = vector.shape_cast %19 : vector<1x64xf32> to vector<1x64xf32>
    %21 = vector.broadcast %20 : vector<1x64xf32> to vector<16x64xf32>
    %c1_i32 = arith.constant 1 : i32
    %22 = vector.broadcast %c1_i32 : i32 to vector<16x1xi32>
    %23 = arith.cmpi eq, %18, %22 : vector<16x1xi32>
    %24 = vector.extract_strided_slice %17 {offsets = [1, 0], sizes = [1, 64], strides = [1, 1]} : vector<6x64xf32> to vector<1x64xf32>
    %25 = vector.shape_cast %23 : vector<16x1xi1> to vector<16x1xi1>
    %26 = vector.broadcast %25 : vector<16x1xi1> to vector<16x64xi1>
    %27 = vector.shape_cast %24 : vector<1x64xf32> to vector<1x64xf32>
    %28 = vector.broadcast %27 : vector<1x64xf32> to vector<16x64xf32>
    %29 = arith.select %26, %28, %21 : vector<16x64xi1>, vector<16x64xf32>
    %c2_i32 = arith.constant 2 : i32
    %30 = vector.broadcast %c2_i32 : i32 to vector<16x1xi32>
    %31 = arith.cmpi eq, %18, %30 : vector<16x1xi32>
    %32 = vector.extract_strided_slice %17 {offsets = [2, 0], sizes = [1, 64], strides = [1, 1]} : vector<6x64xf32> to vector<1x64xf32>
    %33 = vector.shape_cast %31 : vector<16x1xi1> to vector<16x1xi1>
    %34 = vector.broadcast %33 : vector<16x1xi1> to vector<16x64xi1>
    %35 = vector.shape_cast %32 : vector<1x64xf32> to vector<1x64xf32>
    %36 = vector.broadcast %35 : vector<1x64xf32> to vector<16x64xf32>
    %37 = arith.select %34, %36, %29 : vector<16x64xi1>, vector<16x64xf32>
    %c3_i32 = arith.constant 3 : i32
    %38 = vector.broadcast %c3_i32 : i32 to vector<16x1xi32>
    %39 = arith.cmpi eq, %18, %38 : vector<16x1xi32>
    %40 = vector.extract_strided_slice %17 {offsets = [3, 0], sizes = [1, 64], strides = [1, 1]} : vector<6x64xf32> to vector<1x64xf32>
    %41 = vector.shape_cast %39 : vector<16x1xi1> to vector<16x1xi1>
    %42 = vector.broadcast %41 : vector<16x1xi1> to vector<16x64xi1>
    %43 = vector.shape_cast %40 : vector<1x64xf32> to vector<1x64xf32>
    %44 = vector.broadcast %43 : vector<1x64xf32> to vector<16x64xf32>
    %45 = arith.select %42, %44, %37 : vector<16x64xi1>, vector<16x64xf32>
    %c4_i32 = arith.constant 4 : i32
    %46 = vector.broadcast %c4_i32 : i32 to vector<16x1xi32>
    %47 = arith.cmpi eq, %18, %46 : vector<16x1xi32>
    %48 = vector.extract_strided_slice %17 {offsets = [4, 0], sizes = [1, 64], strides = [1, 1]} : vector<6x64xf32> to vector<1x64xf32>
    %49 = vector.shape_cast %47 : vector<16x1xi1> to vector<16x1xi1>
    %50 = vector.broadcast %49 : vector<16x1xi1> to vector<16x64xi1>
    %51 = vector.shape_cast %48 : vector<1x64xf32> to vector<1x64xf32>
    %52 = vector.broadcast %51 : vector<1x64xf32> to vector<16x64xf32>
    %53 = arith.select %50, %52, %45 : vector<16x64xi1>, vector<16x64xf32>
    %c5_i32 = arith.constant 5 : i32
    %54 = vector.broadcast %c5_i32 : i32 to vector<16x1xi32>
    %55 = arith.cmpi eq, %18, %54 : vector<16x1xi32>
    %56 = vector.extract_strided_slice %17 {offsets = [5, 0], sizes = [1, 64], strides = [1, 1]} : vector<6x64xf32> to vector<1x64xf32>
    %57 = vector.shape_cast %55 : vector<16x1xi1> to vector<16x1xi1>
    %58 = vector.broadcast %57 : vector<16x1xi1> to vector<16x64xi1>
    %59 = vector.shape_cast %56 : vector<1x64xf32> to vector<1x64xf32>
    %60 = vector.broadcast %59 : vector<1x64xf32> to vector<16x64xf32>
    %61 = arith.select %58, %60, %53 : vector<16x64xi1>, vector<16x64xf32>
    %62 = arith.addf %16, %61 : vector<16x64xf32>
    %cst_9 = arith.constant dense<0.000000e+00> : vector<64xf32>
    %63 = vector.multi_reduction <add>, %62, %cst_9 [0] : vector<16x64xf32> to vector<64xf32>
    %64 = vector.shape_cast %63 : vector<64xf32> to vector<1x64xf32>
    %65 = arith.mulf %62, %62 : vector<16x64xf32>
    %cst_10 = arith.constant dense<0.000000e+00> : vector<64xf32>
    %66 = vector.multi_reduction <add>, %65, %cst_10 [0] : vector<16x64xf32> to vector<64xf32>
    %67 = vector.shape_cast %66 : vector<64xf32> to vector<1x64xf32>
    %cst_11 = arith.constant 6.250000e-02 : f32
    %68 = vector.broadcast %cst_11 : f32 to vector<1x64xf32>
    %69 = arith.mulf %64, %68 : vector<1x64xf32>
    %cst_12 = arith.constant 6.250000e-02 : f32
    %70 = vector.broadcast %cst_12 : f32 to vector<1x64xf32>
    %71 = arith.mulf %67, %70 : vector<1x64xf32>
    %72 = arith.mulf %69, %69 : vector<1x64xf32>
    %73 = arith.subf %71, %72 : vector<1x64xf32>
    %cst_13 = arith.constant 9.99999974E-6 : f32
    %74 = vector.broadcast %cst_13 : f32 to vector<1x64xf32>
    %75 = arith.addf %73, %74 : vector<1x64xf32>
    %76 = math.rsqrt %75 : vector<1x64xf32>
    %77 = arith.mulf %3, %76 : vector<1x64xf32>
    %78 = arith.mulf %69, %77 : vector<1x64xf32>
    %79 = arith.subf %4, %78 : vector<1x64xf32>
    %80 = vector.broadcast %77 : vector<1x64xf32> to vector<16x64xf32>
    %81 = arith.mulf %62, %80 : vector<16x64xf32>
    %82 = vector.broadcast %79 : vector<1x64xf32> to vector<16x64xf32>
    %83 = arith.addf %81, %82 : vector<16x64xf32>
    %84 = arith.negf %83 : vector<16x64xf32>
    %85 = math.exp %84 : vector<16x64xf32>
    %cst_14 = arith.constant 1.000000e+00 : f32
    %86 = vector.broadcast %cst_14 : f32 to vector<16x64xf32>
    %87 = arith.addf %86, %85 : vector<16x64xf32>
    %88 = arith.divf %86, %87 : vector<16x64xf32>
    %89 = arith.mulf %83, %88 : vector<16x64xf32>
    %90 = arith.truncf %89 : vector<16x64xf32> to vector<16x64xbf16>
    %c0_15 = arith.constant 0 : index
    %c0_16 = arith.constant 0 : index
    %91 = vector.load %arg5[%c0_15, %c0_16] : memref<64x128xbf16, #tpu.memory_space<vmem>>, vector<64x128xbf16>
    %cst_17 = arith.constant dense<0.000000e+00> : vector<16x128xf32>
    %92 = tpu.matmul %90, %91, %cst_17 {dimension_numbers = #tpu.dot_dimension_numbers<[1], [0], [0], [1], [0, 0, 1, 1], [], []>} : vector<16x64xbf16>, vector<64x128xbf16>, vector<16x128xf32> -> vector<16x128xf32>
    %93 = vector.broadcast %2 : vector<1x128xf32> to vector<16x128xf32>
    %94 = arith.addf %92, %93 : vector<16x128xf32>
    %95 = vector.extract_strided_slice %94 {offsets = [0, 0], sizes = [16, 64], strides = [1, 1]} : vector<16x128xf32> to vector<16x64xf32>
    %96 = vector.extract_strided_slice %94 {offsets = [0, 64], sizes = [16, 64], strides = [1, 1]} : vector<16x128xf32> to vector<16x64xf32>
    %cst_18 = arith.constant 5.000000e-01 : f32
    %97 = vector.broadcast %cst_18 : f32 to vector<16x64xf32>
    %98 = arith.mulf %97, %96 : vector<16x64xf32>
    %99 = math.exp %98 : vector<16x64xf32>
    %c0_19 = arith.constant 0 : index
    %c0_20 = arith.constant 0 : index
    %100 = vector.load %arg2[%c0_19, %c0_20] : memref<16x64xf32, #tpu.memory_space<vmem>>, vector<16x64xf32>
    %101 = arith.mulf %100, %99 : vector<16x64xf32>
    %102 = arith.addf %95, %101 : vector<16x64xf32>
    %103 = arith.truncf %102 : vector<16x64xf32> to vector<16x64xbf16>
    %c0_21 = arith.constant 0 : index
    %c0_22 = arith.constant 0 : index
    %104 = vector.load %arg6[%c0_21, %c0_22] : memref<64x32xbf16, #tpu.memory_space<vmem>>, vector<64x32xbf16>
    %cst_23 = arith.constant dense<0.000000e+00> : vector<16x32xf32>
    %105 = tpu.matmul %103, %104, %cst_23 {dimension_numbers = #tpu.dot_dimension_numbers<[1], [0], [0], [1], [0, 0, 1, 1], [], []>} : vector<16x64xbf16>, vector<64x32xbf16>, vector<16x32xf32> -> vector<16x32xf32>
    %106 = vector.broadcast %6 : vector<1x32xf32> to vector<16x32xf32>
    %107 = arith.addf %105, %106 : vector<16x32xf32>
    %cst_24 = arith.constant dense<0.000000e+00> : vector<32xf32>
    %108 = vector.multi_reduction <add>, %107, %cst_24 [0] : vector<16x32xf32> to vector<32xf32>
    %109 = vector.shape_cast %108 : vector<32xf32> to vector<1x32xf32>
    %110 = arith.mulf %107, %107 : vector<16x32xf32>
    %cst_25 = arith.constant dense<0.000000e+00> : vector<32xf32>
    %111 = vector.multi_reduction <add>, %110, %cst_25 [0] : vector<16x32xf32> to vector<32xf32>
    %112 = vector.shape_cast %111 : vector<32xf32> to vector<1x32xf32>
    %cst_26 = arith.constant 6.250000e-02 : f32
    %113 = vector.broadcast %cst_26 : f32 to vector<1x32xf32>
    %114 = arith.mulf %109, %113 : vector<1x32xf32>
    %cst_27 = arith.constant 6.250000e-02 : f32
    %115 = vector.broadcast %cst_27 : f32 to vector<1x32xf32>
    %116 = arith.mulf %112, %115 : vector<1x32xf32>
    %117 = arith.mulf %114, %114 : vector<1x32xf32>
    %118 = arith.subf %116, %117 : vector<1x32xf32>
    %cst_28 = arith.constant 9.99999974E-6 : f32
    %119 = vector.broadcast %cst_28 : f32 to vector<1x32xf32>
    %120 = arith.addf %118, %119 : vector<1x32xf32>
    %121 = math.rsqrt %120 : vector<1x32xf32>
    %122 = arith.mulf %7, %121 : vector<1x32xf32>
    %123 = arith.mulf %114, %122 : vector<1x32xf32>
    %124 = arith.subf %8, %123 : vector<1x32xf32>
    %125 = vector.broadcast %122 : vector<1x32xf32> to vector<16x32xf32>
    %126 = arith.mulf %107, %125 : vector<16x32xf32>
    %127 = vector.broadcast %124 : vector<1x32xf32> to vector<16x32xf32>
    %128 = arith.addf %126, %127 : vector<16x32xf32>
    %129 = arith.negf %128 : vector<16x32xf32>
    %130 = math.exp %129 : vector<16x32xf32>
    %cst_29 = arith.constant 1.000000e+00 : f32
    %131 = vector.broadcast %cst_29 : f32 to vector<16x32xf32>
    %132 = arith.addf %131, %130 : vector<16x32xf32>
    %133 = arith.divf %131, %132 : vector<16x32xf32>
    %134 = arith.mulf %128, %133 : vector<16x32xf32>
    %135 = arith.truncf %134 : vector<16x32xf32> to vector<16x32xbf16>
    %c0_30 = arith.constant 0 : index
    %c0_31 = arith.constant 0 : index
    %136 = vector.load %arg7[%c0_30, %c0_31] : memref<32x32xbf16, #tpu.memory_space<vmem>>, vector<32x32xbf16>
    %cst_32 = arith.constant dense<0.000000e+00> : vector<16x32xf32>
    %137 = tpu.matmul %135, %136, %cst_32 {dimension_numbers = #tpu.dot_dimension_numbers<[1], [0], [0], [1], [0, 0, 1, 1], [], []>} : vector<16x32xbf16>, vector<32x32xbf16>, vector<16x32xf32> -> vector<16x32xf32>
    %138 = vector.broadcast %9 : vector<1x32xf32> to vector<16x32xf32>
    %139 = arith.addf %137, %138 : vector<16x32xf32>
    %140 = arith.subf %139, %15 : vector<16x32xf32>
    %141 = arith.mulf %140, %140 : vector<16x32xf32>
    %cst_33 = arith.constant dense<0.000000e+00> : vector<16xf32>
    %142 = vector.multi_reduction <add>, %141, %cst_33 [1] : vector<16x32xf32> to vector<16xf32>
    %143 = vector.shape_cast %142 : vector<16xf32> to vector<16x1xf32>
    %cst_34 = arith.constant dense<0.000000e+00> : vector<1xf32>
    %144 = vector.multi_reduction <add>, %143, %cst_34 [0] : vector<16x1xf32> to vector<1xf32>
    %145 = vector.shape_cast %144 : vector<1xf32> to vector<1x1xf32>
    %cst_35 = arith.constant 0.001953125 : f32
    %146 = vector.broadcast %cst_35 : f32 to vector<1x1xf32>
    %147 = arith.mulf %145, %146 : vector<1x1xf32>
    %148 = arith.mulf %99, %99 : vector<16x64xf32>
    %cst_36 = arith.constant 1.000000e+00 : f32
    %149 = vector.broadcast %cst_36 : f32 to vector<16x64xf32>
    %150 = arith.addf %149, %96 : vector<16x64xf32>
    %151 = arith.mulf %95, %95 : vector<16x64xf32>
    %152 = arith.subf %150, %151 : vector<16x64xf32>
    %153 = arith.subf %152, %148 : vector<16x64xf32>
    %cst_37 = arith.constant dense<0.000000e+00> : vector<16xf32>
    %154 = vector.multi_reduction <add>, %153, %cst_37 [1] : vector<16x64xf32> to vector<16xf32>
    %155 = vector.shape_cast %154 : vector<16xf32> to vector<16x1xf32>
    %cst_38 = arith.constant dense<0.000000e+00> : vector<1xf32>
    %156 = vector.multi_reduction <add>, %155, %cst_38 [0] : vector<16x1xf32> to vector<1xf32>
    %157 = vector.shape_cast %156 : vector<1xf32> to vector<1x1xf32>
    %cst_39 = arith.constant -3.125000e-02 : f32
    %158 = vector.broadcast %cst_39 : f32 to vector<1x1xf32>
    %159 = arith.mulf %157, %158 : vector<1x1xf32>
    %cst_40 = arith.constant 0.0426666662 : f32
    %160 = vector.broadcast %cst_40 : f32 to vector<1x1xf32>
    %161 = arith.mulf %160, %159 : vector<1x1xf32>
    %162 = arith.addf %147, %161 : vector<1x1xf32>
    %163 = vector.shape_cast %162 : vector<1x1xf32> to vector<1x1xf32>
    %164 = vector.broadcast %163 : vector<1x1xf32> to vector<16x32xf32>
    %165 = tpu.concatenate %102, %139, %164 in 1 : vector<16x64xf32>, vector<16x32xf32>, vector<16x32xf32> -> vector<16x128xf32>
    %c0_41 = arith.constant 0 : index
    %c0_42 = arith.constant 0 : index
    %166 = vector.load %arg9[%c0_41, %c0_42] : memref<16x128xf32, #tpu.memory_space<vmem>>, vector<16x128xf32>
    tpu.vector_store %arg9[%c0_41, %c0_42], %165 {strides = array<i32>} : memref<16x128xf32, #tpu.memory_space<vmem>>, vector<16x128xf32>,
    return
  }
}

</mosaic_0001>

<bundles_post_ra>
// kernel: vae_forward.1
= control target key start
LH: loop header
LB: loop body
LE: loop exit
PB: predicated region body
PF: predicated region fallthrough
CT: control target
= control target key end

     0   :  { %14 = vsyncpa [#allocation3], 0  ;;  %s1182_s0 = inlined_call_operand.vmem [shape: f32[16,32], index: 0, kind: input, shape index: {}]   ;;  %s1183_s1 = inlined_call_operand.vmem [shape: s32[16,1], index: 1, kind: input, shape index: {}]   ;;  %s1184_s2 = inlined_call_operand.hbm [shape: f32[16,64], index: 2, kind: input, shape index: {}]   ;;  %s1185_s3 = inlined_call_operand.hbm [shape: bf16[32,128], index: 3, kind: input, shape index: {}]   ;;  %s1186_s4 = inlined_call_operand.vmem [shape: f32[6,64], index: 4, kind: input, shape index: {}]   ;;  %s1187_s5 = inlined_call_operand.vmem [shape: bf16[64,128], index: 5, kind: input, shape index: {}]   ;;  %s1188_s6 = inlined_call_operand.vmem [shape: bf16[64,32], index: 6, kind: input, shape index: {}]   ;;  %s1189_s7 = inlined_call_operand.hbm [shape: bf16[32,32], index: 7, kind: input, shape index: {}]   ;;  %s1190_s8 = inlined_call_operand.hbm [shape: f32[8,128], index: 8, kind: input, shape index: {}]   ;;  %s1191_s9 = inlined_call_operand.vmem [shape: f32[16,128], index: 9, kind: output, shape index: {}]  }
   0x1   :  { %15 = vsyncpa [#allocation5], 0 }
   0x2   :  { %16 = vsyncpa [#allocation8], 0  ;;  %s946_s30 = smov [#allocation4]  }
   0x3   :  { %s38_s10 = sshll.u32 %s946_s30, 4  ;;  %s39_s10 = int_to_ptr.vmem [resolvable:$true] %s38_s10 }
   0x4   :  { %s868_s11 = scalar_lea.vmem %s39_s10, 256  ;;  %p873_p1 = scmp.lt.s32.totalorder %s39_s10, %s39_s10 }
   0x5   :  { %p869_p0 = scmp.ne.s32.totalorder %s39_s10, %s868_s11  ;;  %p874_p2 = scmp.lt.s32.totalorder %s868_s11, %s868_s11 }
   0x7   :  { %p875_p3 = por %p874_p2, %p873_p1 }
   0x9   :  { %p876_p4 = pnand %p875_p3, %p869_p0 }
   0xb   :  { %879 = shalt.err (!%p876_p4)
}
   0xc   :  { %s947_s12 = smov 64   ;;  %s948_s13 = smov 4  }
   0xd   :  { %44 = dma.hbm_to_vmem [thread:$0]  %s1185_s3, 256, %s39_s10, [#allocation5], %s947_s12, %s947_s12, %s948_s13  }
   0xe   :  { %s949_s16 = smov [#allocation2]  }
   0xf   :  { %s26_s17 = sshll.u32 %s949_s16, 4  ;;  %s27_s17 = int_to_ptr.vmem [resolvable:$true] %s26_s17 }
  0x10   :  { %s888_s18 = scalar_lea.vmem %s27_s17, 256  ;;  %p893_p6 = scmp.lt.s32.totalorder %s27_s17, %s27_s17 }
  0x11   :  { %p889_p5 = scmp.ne.s32.totalorder %s27_s17, %s888_s18  ;;  %p894_p7 = scmp.lt.s32.totalorder %s888_s18, %s888_s18 }
  0x13   :  { %p895_p8 = por %p894_p7, %p893_p6 }
  0x15   :  { %p896_p9 = pnand %p895_p8, %p889_p5 }
  0x17   :  { %899 = shalt.err (!%p896_p9)
}
  0x18   :  { %s950_s19 = smov 128   ;;  %s951_s20 = smov 8  }
  0x19   :  { %32 = dma.hbm_to_vmem [thread:$0]  %s1184_s2, 256, %s27_s17, [#allocation3], %s950_s19, %s950_s19, %s951_s20  }
  0x1a   :  { %s952_s23 = smov [#allocation6]   ;;  %s953_s25 = smov [#allocation7]  }
  0x1b   :  { %s56_s24 = sshll.u32 %s952_s23, 4  ;;  %s69_s3 = sshll.u32 %s953_s25, 4  ;;  %s57_s24 = int_to_ptr.vmem [resolvable:$true] %s56_s24  ;;  %s70_s3 = int_to_ptr.vmem [resolvable:$true] %s69_s3 }
  0x1c   :  { %s908_s26 = scalar_lea.vmem %s57_s24, 256  ;;  %p913_p11 = scmp.lt.s32.totalorder %s57_s24, %s57_s24 }
  0x1d   :  { %p909_p10 = scmp.ne.s32.totalorder %s57_s24, %s908_s26  ;;  %p914_p12 = scmp.lt.s32.totalorder %s908_s26, %s908_s26 }
  0x1f   :  { %p915_p13 = por %p914_p12, %p913_p11 }
  0x21   :  { %p916_p0 = pnand %p915_p13, %p909_p10 }
  0x23   :  { %919 = shalt.err (!%p916_p0)
}
  0x24   :  { %62 = dma.hbm_to_vmem [thread:$0]  %s1189_s7, 256, %s57_s24, [#allocation5], %s947_s12, %s947_s12, %s948_s13  }
  0x25   :  { %s928_s2 = scalar_lea.vmem %s70_s3, 128  ;;  %p933_p2 = scmp.lt.s32.totalorder %s70_s3, %s70_s3 }
  0x26   :  { %p929_p1 = scmp.ne.s32.totalorder %s70_s3, %s928_s2  ;;  %p934_p3 = scmp.lt.s32.totalorder %s928_s2, %s928_s2 }
  0x28   :  { %p935_p4 = por %p934_p3, %p933_p2 }
  0x2a   :  { %p936_p5 = pnand %p935_p4, %p929_p1 }
  0x2c   :  { %939 = shalt.err (!%p936_p5)
}
  0x2d   :  { %72 = dma.hbm_to_vmem [thread:$0]  %s1190_s8, 128, %s70_s3, [#allocation8]  }
  0x2e   :  { %940 = dma.done.wait [#allocation3], 256  }
  0x2f   :  { %941 = vsyncadd [#allocation3], 4294967040 }
  0x30   :  { %942 = dma.done.wait [#allocation5], 512  }
  0x31   :  { %943 = vsyncadd [#allocation5], 4294966784 }
  0x32   :  { %944 = dma.done.wait [#allocation8], 128  }
  0x33   :  { %945 = vsyncadd [#allocation8], 4294967168  ;;  %v954_v0 = vmov 0   ;;  %v955_v1 = vmov 0.0   ;;  %vm956_vm0 = vmmov 0   ;;  %v158_v2 = vld [vmem:[%s1183_s1] sm:$0xff]  ;;  %v151_v19 = vlaneseq }
  0x34   :  { %823 = vset.pattern.permute.xlu1 %v954_v0  ;;  %822 = vset.pattern.permute.xlu0 %v954_v0  ;;  %v159_v3 = vld [vmem:[%s1183_s1 + $0x8] sm:$0xff]  ;;  %vm182_vm1 = vcmp.eq.s32.totalorder %v158_v2, 2  ;;  %vm164_vm2 = vcmp.eq.s32.totalorder %v158_v2, 1  ;;  %v824_v6 = vld [vmem:[#allocation4 + $0x8] sm:$0xff]   ;;  %vm200_vm6 = vcmp.eq.s32.totalorder %v158_v2, 3  ;;  %v825_v9 = vld [vmem:[#allocation4] sm:$0xff]  }
  0x35   :  { %769 = vmatprep.subr.bf16.mxu0 %v955_v1  ;;  %773 = vmatprep.mubr.msk.bf16.mxu0 %vm956_vm0, %v955_v1  ;;  %vm183_vm3 = vcmp.eq.s32.totalorder %v159_v3, 2  ;;  %vm165_vm4 = vcmp.eq.s32.totalorder %v159_v3, 1  ;;  %v184_v4 = vsel %vm182_vm1, 1, %v954_v0  ;;  %v166_v5 = vsel %vm164_vm2, 1, %v954_v0  ;;  %v86_v10 = vld [vmem:[%s1182_s0] sm:$0xff]  ;;  %v87_v11 = vld [vmem:[%s1182_s0 + $0x8] sm:$0xff] }
  0x36   :  { %777 = vmatprep.subr.bf16.mxu1 %v955_v1  ;;  %785 = vmatprep.mubr.msk.bf16.mxu1 %vm956_vm0, %v955_v1  ;;  %v185_v7 = vsel %vm183_vm3, 1, %v954_v0  ;;  %v167_v8 = vsel %vm165_vm4, 1, %v954_v0  ;;  %vm201_vm5 = vcmp.eq.s32.totalorder %v159_v3, 3  ;;  %vm219_vm7 = vcmp.eq.s32.totalorder %v159_v3, 4  ;;  %v157_v27 = vld [vmem:[%s1186_s4] sm:$0x3f] }
  0x37   :  { %187 = vperm.xlu1 %823, %v184_v4   ;;  %169 = vperm.xlu0 %822, %v166_v5   ;;  %vm218_vm8 = vcmp.eq.s32.totalorder %v158_v2, 4  ;;  %vm106_vm9 = vcmask 261120   ;;  %v203_v12 = vsel %vm201_vm5, 1, %v954_v0  ;;  %v202_v13 = vsel %vm200_vm6, 1, %v954_v0  ;;  %s957_s4 = smov 32   ;;  %s958_s17 = smov 96  }
  0x38   :  { %770 = vmatpush3.bf16.msra.mxu0 %v824_v6  ;;  %v221_v14 = vsel %vm219_vm7, 1, %v954_v0  ;;  %v220_v15 = vsel %vm218_vm8, 1, %v954_v0  ;;  %v89_v16 = vpack.c.bf16 %v87_v11, %v86_v10  ;;  %vm237_vm10 = vcmp.eq.s32.totalorder %v159_v3, 5 }
  0x39   :  { %771 = vmatprep.subr.bf16.mxu0 %v955_v1  ;;  %vm236_vm11 = vcmp.eq.s32.totalorder %v158_v2, 5  ;;  %v239_v17 = vsel %vm237_vm10, 1, %v954_v0  ;;  %v1050_v21 = vshrl.u32 %v151_v19, 7  ;;  %vm264_vm7 = vcmask 785664  }
  0x3a   :  { %v238_v18 = vsel %vm236_vm11, 1, %v954_v0  ;;  %vm382_vm8 = vcmask 523264  }
  0x3b   :  { %190 = vperm.xlu1 %823, %v185_v7   ;;  %172 = vperm.xlu0 %822, %v167_v8   ;;  %v162_v23 = vsub.s32 0, %v1050_v21  ;;  %v178_v24 = vsub.s32 1, %v1050_v21  ;;  %v153_v28 = vsub.s32 3, %v1050_v21  ;;  %v196_v29 = vsub.s32 2, %v1050_v21 }
  0x3c   :  { %772 = vmatpush3.bf16.msra.mxu0 %v825_v9  ;;  %v232_v34 = vsub.s32 4, %v1050_v21  ;;  %v250_v35 = vsub.s32 5, %v1050_v21 }
  0x3d   :  { %789 = vmatprep.subr.bf16.mxu0 %v955_v1  ;;  %v163_v30 = vrot.slane %v157_v27, %v162_v23  ;;  %v179_v31 = vrot.slane %v157_v27, %v178_v24  ;;  %v197_v36 = vrot.slane %v157_v27, %v196_v29  ;;  %v215_v37 = vrot.slane %v157_v27, %v153_v28 }
  0x3e   :  { %v233_v42 = vrot.slane %v157_v27, %v232_v34  ;;  %v251_v43 = vrot.slane %v157_v27, %v250_v35 }
  0x3f   :  { %208 = vperm.xlu1 %823, %v203_v12   ;;  %205 = vperm.xlu0 %822, %v202_v13  }
  0x40   :  { %774 = vmatmul.mubr.msk.bf16.vlgmr.msra.gmra.mxu0 %vm106_vm9, %v89_v16 }
  0x41   :  { %797 = vmatprep.mubr.msk.bf16.mxu0 %vm956_vm0, %v955_v1 }
  0x43   :  { %226 = vperm.xlu1 %823, %v221_v14   ;;  %223 = vperm.xlu0 %822, %v220_v15  }
  0x47   :  { %244 = vperm.xlu1 %823, %v239_v17   ;;  %241 = vperm.xlu0 %822, %v238_v18  }
  0xb2   :  { %v188_v20 = vpop.permute.xlu1 %187  ;;  %v170_v22 = vpop.permute.xlu0 %169 }
  0xb3   :  { %vm174_vm12 = vcmp.eq.s32.totalorder %v170_v22, 1  ;;  %vm192_vm14 = vcmp.eq.s32.totalorder %v188_v20, 1 }
  0xb4   :  { %v180_v38 = vsel %vm174_vm12, %v179_v31, %v163_v30 }
  0xb5   :  { %v198_v45 = vsel %vm192_vm14, %v197_v36, %v180_v38 }
  0xb6   :  { %v191_v25 = vpop.permute.xlu1 %190  ;;  %v173_v26 = vpop.permute.xlu0 %172 }
  0xb7   :  { %vm175_vm13 = vcmp.eq.s32.totalorder %v173_v26, 1  ;;  %vm193_vm15 = vcmp.eq.s32.totalorder %v191_v25, 1 }
  0xb8   :  { %v181_v39 = vsel %vm175_vm13, %v179_v31, %v163_v30  ;;  %v1082_v30 = vld [vmem:[#allocation7] sm:$0xff] }
  0xb9   :  { %v199_v44 = vsel %vm193_vm15, %v197_v36, %v181_v39 }
  0xba   :  { %v209_v32 = vpop.permute.xlu1 %208  ;;  %v206_v33 = vpop.permute.xlu0 %205 }
  0xbb   :  { %vm211_vm1 = vcmp.eq.s32.totalorder %v209_v32, 1  ;;  %vm210_vm2 = vcmp.eq.s32.totalorder %v206_v33, 1 }
  0xbc   :  { %v217_v46 = vsel %vm211_vm1, %v215_v37, %v199_v44  ;;  %v216_v47 = vsel %vm210_vm2, %v215_v37, %v198_v45  ;;  %v828_v44 = vld [vmem:[%s1187_s5 + $0x8] sm:$0xff]  }
  0xbe   :  { %v227_v40 = vpop.permute.xlu1 %226  ;;  %v224_v41 = vpop.permute.xlu0 %223 }
  0xbf   :  { %vm229_vm3 = vcmp.eq.s32.totalorder %v227_v40, 1  ;;  %vm228_vm4 = vcmp.eq.s32.totalorder %v224_v41, 1 }
  0xc0   :  { %v235_v50 = vsel %vm229_vm3, %v233_v42, %v217_v46  ;;  %v234_v51 = vsel %vm228_vm4, %v233_v42, %v216_v47 }
  0xc2   :  { %v245_v48 = vpop.permute.xlu1 %244  ;;  %v242_v49 = vpop.permute.xlu0 %241 }
  0xc3   :  { %vm247_vm5 = vcmp.eq.s32.totalorder %v245_v48, 1  ;;  %vm246_vm6 = vcmp.eq.s32.totalorder %v242_v49, 1 }
  0xc4   :  { %v253_v52 = vsel %vm247_vm5, %v251_v43, %v235_v50  ;;  %v252_v53 = vsel %vm246_vm6, %v251_v43, %v234_v51  ;;  %v826_v43 = vld [vmem:[%s1187_s5 + $0x18] sm:$0xff]  }
  0xc5   :  { %258 = vrot.lane.b32.xlu1 %v253_v52, %s957_s4  ;;  %256 = vrot.lane.b32.xlu0 %v252_v53, %s957_s4 }
  0xc6   :  { %778 = vmatpush3.bf16.msra.mxu1 %v826_v43 }
  0xc7   :  { %779 = vmatprep.subr.bf16.mxu1 %v955_v1 }
 0x100   :  { %v1075_v54 = vpop.f32.mrf.mxu0 }
 0x102   :  { %v775_v55 = vpop.f32.mrf.mxu0 }
 0x104   :  { %v1077_v56 = vpop.f32.mrf.mxu0 }
 0x106   :  { %v776_v57 = vpop.f32.mrf.mxu0 }
 0x137   :  { %v259_v58 = vpop.permute.xlu1 %258  ;;  %v257_v59 = vpop.permute.xlu0 %256 }
 0x138   :  { %v263_v60 = vadd.f32 %v259_v58, %v1077_v56  ;;  %v262_v61 = vadd.f32 %v257_v59, %v1075_v54 }
 0x13a   :  { %v266_v62 = vsel %vm264_vm7, %v263_v60, 0.0  ;;  %v275_v63 = vmul.f32 %v263_v60, %v263_v60  ;;  %v265_v0 = vsel %vm264_vm7, %v262_v61, 0.0  ;;  %v274_v2 = vmul.f32 %v262_v61, %v262_v61 }
 0x13b   :  { %v267_v3 = vadd.f32 %v266_v62, %v265_v0 }
 0x13c   :  { %v277_v4 = vsel %vm264_vm7, %v275_v63, 0.0  ;;  %v276_v5 = vsel %vm264_vm7, %v274_v2, 0.0 }
 0x13d   :  { %v268_v6 = vrot.slane %v267_v3, 4  ;;  %v278_v7 = vadd.f32 %v277_v4, %v276_v5  ;;  %v354_v4 = vrot.slane %v1082_v30, %v162_v23  ;;  %v833_v23 = vld [vmem:[%s1188_s6] sm:$0xff]  }
 0x13f   :  { %v269_v8 = vadd.f32 %v268_v6, %v267_v3  ;;  %v279_v9 = vrot.slane %v278_v7, 4  ;;  %v831_v3 = vld [vmem:[%s1188_s6 + $0x10] sm:$0xff]  }
 0x141   :  { %v270_v10 = vrot.slane %v269_v8, 2  ;;  %v280_v11 = vadd.f32 %v279_v9, %v278_v7 }
 0x143   :  { %v271_v12 = vadd.f32 %v270_v10, %v269_v8  ;;  %v281_v13 = vrot.slane %v280_v11, 2 }
 0x145   :  { %v272_v14 = vrot.slane %v271_v12, 1  ;;  %v282_v15 = vadd.f32 %v281_v13, %v280_v11 }
 0x147   :  { %v273_v16 = vadd.f32 %v272_v14, %v271_v12  ;;  %v283_v17 = vrot.slane %v282_v15, 1 }
 0x149   :  { %v284_v18 = vadd.f32 %v283_v17, %v282_v15  ;;  %v285_v19 = vmul.f32 0.0625, %v273_v16  ;;  %v832_v15 = vld [vmem:[%s1188_s6 + $0x8] sm:$0xff]  }
 0x14b   :  { %v286_v20 = vmul.f32 0.0625, %v284_v18  ;;  %v287_v22 = vmul.f32 %v285_v19, %v285_v19 }
 0x14d   :  { %v288_v25 = vsub.f32 %v286_v20, %v287_v22  ;;  %v433_v20 = vld [vmem:[#allocation2] sm:$0xff] }
 0x14f   :  { %v289_v26 = vadd.f32 1e-05, %v288_v25  ;;  %v434_v25 = vld [vmem:[#allocation2 + $0x8] sm:$0xff] }
 0x151   :  { %836 = vrsqrt.f32 %v289_v26 }
 0x15e   :  { %v837_v27 = vpop.eup %836 }
 0x15f   :  { %292 = vrot.lane.b32.xlu0 %v837_v27, %s958_s17 }
 0x1d1   :  { %v293_v31 = vpop.permute.xlu0 %292 }
 0x1d2   :  { %v295_v32 = vmul.f32 %v293_v31, %v1082_v30 }
 0x1d4   :  { %v297_v33 = vrot.slane %v295_v32, 1  ;;  %v311_v36 = vrot.slane %v295_v32, %v178_v24  ;;  %v827_v24 = vld [vmem:[%s1187_s5 + $0x10] sm:$0xff]  }
 0x1d5   :  { %780 = vmatpush3.bf16.msra.mxu1 %v827_v24 }
 0x1d6   :  { %298 = vrot.lane.b32.xlu1 %v297_v33, %s957_s4  ;;  %781 = vmatprep.subr.bf16.mxu1 %v955_v1 }
 0x1d9   :  { %782 = vmatpush3.bf16.msra.mxu1 %v828_v44 }
 0x1da   :  { %313 = vrot.lane.b32.xlu1 %v311_v36, %s957_s4  ;;  %783 = vmatprep.subr.bf16.mxu1 %v955_v1 }
 0x248   :  { %v299_v37 = vpop.permute.xlu1 %298 }
 0x249   :  { %v301_v38 = vmul.f32 %v299_v37, %v285_v19 }
 0x24b   :  { %v303_v39 = vrot.slane %v301_v38, 6 }
 0x24c   :  { %v314_v45 = vpop.permute.xlu1 %313 }
 0x24d   :  { %304 = vrot.lane.b32.xlu0 %v303_v39, %s958_s17  ;;  %v316_v46 = vmul.f32 %v314_v45, %v262_v61  ;;  %v317_v47 = vmul.f32 %v314_v45, %v263_v60  ;;  %v830_v61 = vld [vmem:[%s1188_s6 + $0x18] sm:$0xff]  }
 0x24e   :  { %790 = vmatpush3.bf16.msra.mxu0 %v830_v61 }
 0x24f   :  { %791 = vmatprep.subr.bf16.mxu0 %v955_v1 }
 0x252   :  { %792 = vmatpush3.bf16.msra.mxu0 %v831_v3 }
 0x253   :  { %793 = vmatprep.subr.bf16.mxu0 %v955_v1 }
 0x256   :  { %794 = vmatpush3.bf16.msra.mxu0 %v832_v15 }
 0x257   :  { %795 = vmatprep.subr.bf16.mxu0 %v955_v1 }
 0x25a   :  { %796 = vmatpush3.bf16.msra.mxu0 %v833_v23 }
 0x2bf   :  { %v305_v40 = vpop.permute.xlu0 %304 }
 0x2c0   :  { %v307_v41 = vsub.f32 %v1082_v30, %v305_v40 }
 0x2c2   :  { %v321_v42 = vrot.slane %v307_v41, %v196_v29  ;;  %v829_v29 = vld [vmem:[%s1187_s5] sm:$0xff]  }
 0x2c3   :  { %784 = vmatpush3.bf16.msra.mxu1 %v829_v29 }
 0x2c4   :  { %323 = vrot.lane.b32.xlu0 %v321_v42, %s957_s4  ;;  %801 = vmatprep.subr.bf16.mxu1 %v955_v1 }
 0x336   :  { %v324_v48 = vpop.permute.xlu0 %323 }
 0x337   :  { %v326_v49 = vadd.f32 %v324_v48, %v316_v46  ;;  %v327_v50 = vadd.f32 %v324_v48, %v317_v47 }
 0x339   :  { %v736_v51 = vmul.f32 -1.442695, %v326_v49  ;;  %v737_v52 = vmul.f32 -1.442695, %v327_v50 }
 0x33b   :  { %838 = vpow2.f32 %v736_v51  ;;  %v459_v51 = vrot.slane %v1082_v30, %v232_v34 }
 0x33c   :  { %840 = vpow2.f32 %v737_v52 }
 0x348   :  { %v839_v53 = vpop.eup %838 }
 0x349   :  { %v841_v55 = vpop.eup %840  ;;  %v334_v57 = vadd.f32 1.0, %v839_v53 }
 0x34a   :  { %v335_v58 = vadd.f32 1.0, %v841_v55 }
 0x34b   :  { %842 = vrcp.f32 %v334_v57 }
 0x34c   :  { %844 = vrcp.f32 %v335_v58 }
 0x358   :  { %v843_v59 = vpop.eup %842 }
 0x359   :  { %v845_v62 = vpop.eup %844  ;;  %v340_v63 = vmul.f32 %v843_v59, %v326_v49  ;;  %v834_v49 = vld [vmem:[#allocation6 + $0x8] sm:$0xff]  }
 0x35a   :  { %v341_v0 = vmul.f32 %v845_v62, %v327_v50  ;;  %v835_v50 = vld [vmem:[#allocation6] sm:$0xff]  }
 0x35c   :  { %v342_v2 = vpack.c.bf16 %v341_v0, %v340_v63 }
 0x35e   :  { %356 = vrot.lane.b32.xlu1 %v342_v2, %s958_s17 }
 0x3d0   :  { %v357_v60 = vpop.permute.xlu1 %356 }
 0x3d1   :  { %786 = vmatmul.mubr.msk.bf16.vlgmr.msra.gmra.mxu1 %vm382_vm8, %v357_v60 }
 0x3d2   :  { %805 = vmatprep.mubr.msk.bf16.mxu1 %vm956_vm0, %v955_v1  ;;  %802 = vmatpush3.bf16.msra.mxu1 %v834_v49  ;;  %v593_v49 = vsub.s32 7, %v1050_v21  ;;  %vm721_vm0 = vcmask 785408  }
 0x3d3   :  { %803 = vmatprep.subr.bf16.mxu1 %v955_v1 }
 0x3d6   :  { %804 = vmatpush3.bf16.msra.mxu1 %v835_v50  ;;  %v154_v50 = vrot.slane %v1082_v30, %v153_v28 }
 0x491   :  { %v420_v5 = vpop.f32.mrf.mxu1 }
 0x492   :  { %v421_v6 = vadd.f32 %v420_v5, %v354_v4 }
 0x493   :  { %v787_v7 = vpop.f32.mrf.mxu1 }
 0x494   :  { %v427_v8 = vmul.f32 0.5, %v421_v6  ;;  %v673_v17 = vmul.f32 %v421_v6, %v421_v6  ;;  %v671_v27 = vadd.f32 1.0, %v421_v6 }
 0x495   :  { %v423_v9 = vpop.f32.mrf.mxu1 }
 0x496   :  { %v429_v10 = vmul.f32 1.442695, %v427_v8  ;;  %v424_v11 = vadd.f32 %v423_v9, %v354_v4 }
 0x497   :  { %v788_v12 = vpop.f32.mrf.mxu1 }
 0x498   :  { %846 = vpow2.f32 %v429_v10  ;;  %v428_v13 = vmul.f32 0.5, %v424_v11  ;;  %v674_v19 = vmul.f32 %v424_v11, %v424_v11  ;;  %v672_v40 = vadd.f32 1.0, %v424_v11 }
 0x49a   :  { %v431_v14 = vmul.f32 1.442695, %v428_v13 }
 0x49c   :  { %848 = vpow2.f32 %v431_v14 }
 0x4a5   :  { %v847_v16 = vpop.eup %846 }
 0x4a6   :  { %437 = vrot.lane.b32.xlu0 %v847_v16, %s947_s12  ;;  %v669_v37 = vmul.f32 %v847_v16, %v847_v16 }
 0x4a9   :  { %v849_v18 = vpop.eup %848 }
 0x4aa   :  { %677 = vrot.lane.b32.xlu0 %v673_v17, %s947_s12  ;;  %439 = vrot.lane.b32.xlu1 %v849_v18, %s947_s12  ;;  %v670_v44 = vmul.f32 %v849_v18, %v849_v18 }
 0x4ae   :  { %679 = vrot.lane.b32.xlu1 %v674_v19, %s947_s12 }
 0x518   :  { %v438_v22 = vpop.permute.xlu0 %437 }
 0x519   :  { %v443_v26 = vmul.f32 %v438_v22, %v433_v20 }
 0x51b   :  { %v1136_v38 = vadd.f32 %v443_v26, %v421_v6 }
 0x51c   :  { %v678_v31 = vpop.permute.xlu0 %677  ;;  %v440_v32 = vpop.permute.xlu1 %439 }
 0x51d   :  { %v683_v33 = vsub.f32 %v671_v27, %v678_v31  ;;  %v444_v36 = vmul.f32 %v440_v32, %v434_v25  ;;  %v568_v27 = vsub.s32 6, %v1050_v21 }
 0x51f   :  { %v1138_v39 = vadd.f32 %v444_v36, %v424_v11  ;;  %v685_v41 = vsub.f32 %v683_v33, %v669_v37 }
 0x520   :  { %v680_v42 = vpop.permute.xlu1 %679 }
 0x521   :  { %v447_v43 = vpack.c.bf16 %v1138_v39, %v1136_v38  ;;  %v684_v24 = vsub.f32 %v672_v40, %v680_v42  ;;  %689 = vrot.lane.b32.xlu0 %v685_v41, %s947_s12 }
 0x523   :  { %798 = vmatmul.mubr.msk.bf16.vlgmr.msra.gmra.mxu0 %vm382_vm8, %v447_v43  ;;  %v686_v29 = vsub.f32 %v684_v24, %v670_v44 }
 0x525   :  { %691 = vrot.lane.b32.xlu1 %v686_v29, %s947_s12 }
 0x593   :  { %v690_v45 = vpop.permute.xlu0 %689 }
 0x594   :  { %v695_v46 = vsel %vm382_vm8, %v690_v45, 0.0 }
 0x595   :  { %696 = vadd.xlane.f32.xlu0 %v695_v46 }
 0x597   :  { %v692_v47 = vpop.permute.xlu1 %691 }
 0x598   :  { %v698_v48 = vsel %vm382_vm8, %v692_v47, 0.0 }
 0x599   :  { %699 = vadd.xlane.f32.xlu1 %v698_v48 }
 0x5e3   :  { %v521_v52 = vpop.f32.mrf.mxu0 }
 0x5e4   :  { %v522_v53 = vadd.f32 %v521_v52, %v459_v51 }
 0x5e5   :  { %v799_v55 = vpop.f32.mrf.mxu0 }
 0x5e6   :  { %v537_v58 = vmul.f32 %v522_v53, %v522_v53  ;;  %v528_v63 = vsel %vm106_vm9, %v522_v53, 0.0 }
 0x5e7   :  { %v524_v57 = vpop.f32.mrf.mxu0 }
 0x5e8   :  { %v525_v59 = vadd.f32 %v524_v57, %v459_v51  ;;  %v539_v1 = vsel %vm106_vm9, %v537_v58, 0.0  ;;  %v594_v51 = vrot.slane %v1082_v30, %v593_v49 }
 0x5e9   :  { %v800_v62 = vpop.f32.mrf.mxu0 }
 0x5ea   :  { %v529_v0 = vsel %vm106_vm9, %v525_v59, 0.0  ;;  %v538_v2 = vmul.f32 %v525_v59, %v525_v59  ;;  %v156_v62 = vadd.f32 %v154_v50, %v1077_v56 }
 0x5eb   :  { %v530_v60 = vadd.f32 %v529_v0, %v528_v63 }
 0x5ec   :  { %v540_v61 = vsel %vm106_vm9, %v538_v2, 0.0 }
 0x5ed   :  { %v531_v3 = vrot.slane %v530_v60, 4  ;;  %v541_v4 = vadd.f32 %v540_v61, %v539_v1 }
 0x5ef   :  { %v532_v34 = vadd.f32 %v531_v3, %v530_v60  ;;  %v542_v5 = vrot.slane %v541_v4, 4 }
 0x5f1   :  { %v533_v6 = vrot.slane %v532_v34, 2  ;;  %v543_v7 = vadd.f32 %v542_v5, %v541_v4 }
 0x5f3   :  { %v534_v8 = vadd.f32 %v533_v6, %v532_v34  ;;  %v544_v9 = vrot.slane %v543_v7, 2 }
 0x5f5   :  { %v535_v10 = vrot.slane %v534_v8, 1  ;;  %v545_v11 = vadd.f32 %v544_v9, %v543_v7 }
 0x5f7   :  { %v536_v12 = vadd.f32 %v535_v10, %v534_v8  ;;  %v546_v13 = vrot.slane %v545_v11, 1 }
 0x5f9   :  { %v547_v14 = vadd.f32 %v546_v13, %v545_v11  ;;  %v548_v15 = vmul.f32 0.0625, %v536_v12 }
 0x5fb   :  { %v549_v23 = vmul.f32 0.0625, %v547_v14  ;;  %v550_v16 = vmul.f32 %v548_v15, %v548_v15 }
 0x5fd   :  { %v551_v17 = vsub.f32 %v549_v23, %v550_v16 }
 0x5ff   :  { %v552_v18 = vadd.f32 1e-05, %v551_v17 }
 0x601   :  { %850 = vrsqrt.f32 %v552_v18 }
 0x60e   :  { %v851_v19 = vpop.eup %850 }
 0x60f   :  { %v554_v20 = vmul.f32 %v851_v19, %v1082_v30 }
 0x611   :  { %v555_v22 = vmul.f32 %v554_v20, %v548_v15  ;;  %v563_v26 = vrot.slane %v554_v20, %v250_v35 }
 0x613   :  { %v557_v25 = vrot.slane %v555_v22, 7  ;;  %v564_v32 = vmul.f32 %v563_v26, %v522_v53  ;;  %v565_v33 = vmul.f32 %v563_v26, %v525_v59  ;;  %v155_v53 = vadd.f32 %v154_v50, %v1075_v54 }
 0x615   :  { %v559_v31 = vsub.f32 %v1082_v30, %v557_v25 }
 0x617   :  { %v569_v36 = vrot.slane %v559_v31, %v568_v27 }
 0x619   :  { %v570_v37 = vadd.f32 %v569_v36, %v564_v32  ;;  %v571_v40 = vadd.f32 %v569_v36, %v565_v33 }
 0x61b   :  { %v748_v41 = vmul.f32 -1.442695, %v570_v37  ;;  %v749_v42 = vmul.f32 -1.442695, %v571_v40 }
 0x61d   :  { %852 = vpow2.f32 %v748_v41 }
 0x61e   :  { %854 = vpow2.f32 %v749_v42  ;;  %v697_v1 = vpop.xlane.xlu0 %696 }
 0x622   :  { %v700_v54 = vpop.xlane.xlu1 %699 }
 0x623   :  { %v701_v61 = vadd.f32 %v700_v54, %v697_v1 }
 0x625   :  { %v702_v3 = vrot.slane %v701_v61, 4 }
 0x627   :  { %v703_v4 = vadd.f32 %v702_v3, %v701_v61 }
 0x629   :  { %v704_v34 = vrot.slane %v703_v4, 2 }
 0x62a   :  { %v853_v43 = vpop.eup %852 }
 0x62b   :  { %v855_v24 = vpop.eup %854  ;;  %v578_v44 = vadd.f32 1.0, %v853_v43  ;;  %v705_v5 = vadd.f32 %v704_v34, %v703_v4 }
 0x62c   :  { %v579_v29 = vadd.f32 1.0, %v855_v24 }
 0x62d   :  { %856 = vrcp.f32 %v578_v44  ;;  %v706_v8 = vrot.slane %v705_v5, 1 }
 0x62e   :  { %858 = vrcp.f32 %v579_v29 }
 0x62f   :  { %v707_v11 = vadd.f32 %v706_v8, %v705_v5 }
 0x631   :  { %v708_v14 = vmul.f32 -0.03125, %v707_v11 }
 0x633   :  { %v709_v16 = vmul.f32 0.042666666, %v708_v14 }
 0x63a   :  { %v857_v35 = vpop.eup %856 }
 0x63b   :  { %v859_v45 = vpop.eup %858  ;;  %v584_v46 = vmul.f32 %v857_v35, %v570_v37 }
 0x63c   :  { %v585_v47 = vmul.f32 %v859_v45, %v571_v40 }
 0x63e   :  { %v586_v48 = vpack.c.bf16 %v585_v47, %v584_v46 }
 0x640   :  { %806 = vmatmul.mubr.msk.bf16.vlgmr.msra.gmra.mxu1 %vm106_vm9, %v586_v48 }
 0x700   :  { %v644_v52 = vpop.f32.mrf.mxu1 }
 0x701   :  { %v645_v55 = vadd.f32 %v644_v52, %v594_v51 }
 0x702   :  { %v807_v57 = vpop.f32.mrf.mxu1 }
 0x703   :  { %v651_v58 = vsub.f32 %v645_v55, %v155_v53  ;;  %713 = vrot.lane.b32.xlu1 %v645_v55, %s947_s12 }
 0x704   :  { %v647_v59 = vpop.f32.mrf.mxu1 }
 0x705   :  { %v648_v63 = vadd.f32 %v647_v59, %v594_v51  ;;  %v653_v0 = vmul.f32 %v651_v58, %v651_v58 }
 0x706   :  { %v808_v2 = vpop.f32.mrf.mxu1 }
 0x707   :  { %v652_v60 = vsub.f32 %v648_v63, %v156_v62  ;;  %v655_v21 = vsel %vm106_vm9, %v653_v0, 0.0 }
 0x708   :  { %656 = vadd.xlane.f32.xlu0 %v655_v21 }
 0x709   :  { %v654_v28 = vmul.f32 %v652_v60, %v652_v60 }
 0x70b   :  { %v658_v30 = vsel %vm106_vm9, %v654_v28, 0.0 }
 0x70c   :  { %659 = vadd.xlane.f32.xlu0 %v658_v30 }
 0x722   :  { %715 = vrot.lane.b32.xlu0 %v648_v63, %s947_s12 }
 0x775   :  { %v714_v17 = vpop.permute.xlu1 %713 }
 0x776   :  { %v719_v22 = vsel %vm382_vm8, %v1136_v38, %v714_v17 }
 0x791   :  { %v657_v56 = vpop.xlane.xlu0 %656 }
 0x795   :  { %v660_v6 = vpop.xlane.xlu0 %659 }
 0x796   :  { %v661_v7 = vadd.f32 %v660_v6, %v657_v56 }
 0x798   :  { %v662_v9 = vrot.slane %v661_v7, 4 }
 0x799   :  { %v716_v19 = vpop.permute.xlu0 %715 }
 0x79a   :  { %v663_v10 = vadd.f32 %v662_v9, %v661_v7  ;;  %v720_v25 = vsel %vm382_vm8, %v1138_v39, %v716_v19 }
 0x79c   :  { %v664_v12 = vrot.slane %v663_v10, 2 }
 0x79e   :  { %v665_v13 = vadd.f32 %v664_v12, %v663_v10 }
 0x7a0   :  { %v666_v15 = vrot.slane %v665_v13, 1 }
 0x7a2   :  { %v667_v23 = vadd.f32 %v666_v15, %v665_v13 }
 0x7a4   :  { %v668_v18 = vmul.f32 0.001953125, %v667_v23 }
 0x7a6   :  { %v710_v20 = vadd.f32 %v709_v16, %v668_v18 }
 0x7a8   :  { %v722_v26 = vsel %vm721_vm0, %v719_v22, %v710_v20  ;;  %v723_v27 = vsel %vm721_vm0, %v720_v25, %v710_v20 }
 0x7a9   :  { %724 = vst [vmem:[%s1191_s9] sm:$0xff] %v722_v26  ;;  %725 = vst [vmem:[%s1191_s9 + $0x8] sm:$0xff] %v723_v27 }
 0x7aa   :  { %730 = vsyncpa [#allocation3], 1 }
 0x7ab   :  { %731 = vsyncpa [#allocation5], 1 }
 0x7ac   :  { %732 = vsyncpa [#allocation8], 1 }

</bundles_post_ra>
